<compile_context>
chip_gen: v5e
topology: v5e:2x2
jax: 0.10.0
libtpu: 0.0.40
codegen_flags: <defaults>
</compile_context>

<pallas_src>
import jax
import jax.numpy as jnp
from jax.experimental import pallas as pl
from jax.experimental.pallas import tpu as pltpu


def _reduce_kernel(x_ref, w_ref, o_ref):
    # x_ref: (TILE_BR, T*D) tile of packed rows (original dtype)
    # w_ref: (T*D, D) float32 static reduction matrix (downsampled time-mean)
    # o_ref: (TILE_BR, D) float32 features
    x = x_ref[...].astype(jnp.float32)  # cast in VMEM (no extra HBM pass)
    o_ref[...] = jnp.dot(x, w_ref[...], preferred_element_type=jnp.float32)


def _build_reduction_matrix(t, d, downsampling_factor):
    """W[t*D + k, k] = 1/T_kept for kept timesteps (t % ds == 0), else 0."""
    t_kept = -(-t // downsampling_factor)  # ceil(T / ds) == len(range(0, T, ds))
    rows = jnp.arange(t * d)
    t_idx = rows // d
    d_idx = rows % d
    keep = (t_idx % downsampling_factor == 0).astype(jnp.float32) / t_kept
    eye_cols = (d_idx[:, None] == jnp.arange(d)[None, :]).astype(jnp.float32)
    return keep[:, None] * eye_cols  # (T*D, D) float32


def summary_statistic_pallas(x2d, w):
    """x2d: (BR, T*D) any float dtype; w: (T*D, D) f32 -> (BR, D) f32 features."""
    BR, TD = x2d.shape
    D = w.shape[1]
    itemsize = jnp.dtype(x2d.dtype).itemsize

    # Tile the batch*rollout axis: ~4 MiB per input buffer (8 MiB double-buffered),
    # multiple of 8 sublanes, capped at 2048 rows.  Small problems use one tile.
    target_bytes = 4 * 1024 * 1024
    cap = max(8, min(2048, (target_bytes // max(TD * itemsize, 1)) // 8 * 8))
    tile_br = BR if BR <= cap else cap
    grid = (pl.cdiv(BR, tile_br),)

    return pl.pallas_call(
        _reduce_kernel,
        out_shape=jax.ShapeDtypeStruct((BR, D), jnp.float32),
        grid_spec=pltpu.PrefetchScalarGridSpec(
            num_scalar_prefetch=0,
            grid=grid,
            in_specs=[
                pl.BlockSpec((tile_br, TD), lambda i: (i, 0)),
                pl.BlockSpec((TD, D), lambda i: (0, 0)),  # tiny, constant block
            ],
            out_specs=pl.BlockSpec((tile_br, D), lambda i: (i, 0)),
        ),
        compiler_params=pltpu.CompilerParams(
            dimension_semantics=("parallel",),
        ),
    )(x2d, w)


def embedding_forward(data, dim_data, downsampling_factor=1):
    """Forward pass of the Embedding module.

    data: packed [batch_size, num_rollouts, len_time_series * dim_data]
    returns: [batch_size, num_rollouts * dim_output]  (dim_output == dim_data here)
    """
    assert data.ndim == 3, f"packed data must be 3-dim, got {data.ndim}"
    b, r, flat = data.shape
    assert flat % dim_data == 0
    t = flat // dim_data

    # Packed 2D view: (B*R, T*D).  Contiguous reshape, no copy; the downsample
    # and dtype cast are fused into the kernel (no extra HBM passes).
    x2d = data.reshape(b * r, t * dim_data)
    w = _build_reduction_matrix(t, dim_data, downsampling_factor)

    feats = summary_statistic_pallas(x2d, w)  # (B*R, D) float32
    x = feats.reshape(b, r * dim_data)        # concat over rollouts, stack over batch
    assert x.shape == (b, r * dim_data)       # mirrors the PyTorch shape assertion
    return x


if __name__ == "__main__":
    # Small, deterministic example:
    # state_dim = 4, act_dim = 2  =>  dim_data = 6
    # len_time_series = 16, downsampling_factor = 2, num_rollouts = 3, batch = 2
    batch_size, num_rollouts, T, dim_data = 2, 3, 16, 6
    downsampling_factor = 2

    key = jax.random.PRNGKey(0)
    packed = jax.random.normal(
        key, (batch_size, num_rollouts, T * dim_data), dtype=jnp.float32
    )

    out = embedding_forward(packed, dim_data, downsampling_factor)
    out = jax.block_until_ready(out)

    # pure-JAX reference for correctness
    ref = packed.reshape(batch_size, num_rollouts, T, dim_data)
    ref = ref[:, :, ::downsampling_factor, :]
    ref = jnp.mean(ref, axis=2).reshape(batch_size, num_rollouts * dim_data)

    assert out.shape == (batch_size, num_rollouts * dim_data), out.shape
    assert jnp.allclose(out, ref, atol=1e-5, rtol=1e-5)
    print("KERNEL_OK")
</pallas_src>

<mosaic_0001>
module attributes {stable_mosaic.version = 11 : i64} {
  func.func @_reduce_kernel(%arg0: i32, %arg1: memref<6x96xf32, #tpu.memory_space<vmem>>, %arg2: memref<96x6xf32, #tpu.memory_space<vmem>>, %arg3: memref<6x6xf32, #tpu.memory_space<vmem>>) attributes {dimension_semantics = [#tpu.dimension_semantics<parallel>], iteration_bounds = array<i64: 1>, scalar_prefetch = 0 : i64, scratch_operands = 0 : i64, tpu.core_type = #tpu.core_type<tc>, window_params = [{transform_indices = @transform_0, window_bounds = array<i64: 6, 96>}, {pipeline_mode = #tpu.pipeline_mode<synchronous>, transform_indices = @transform_1, window_bounds = array<i64: 96, 6>}, {transform_indices = @transform_2, window_bounds = array<i64: 6, 6>}]} {
    %c0 = arith.constant 0 : index
    %c0_0 = arith.constant 0 : index
    %0 = vector.load %arg1[%c0, %c0_0] : memref<6x96xf32, #tpu.memory_space<vmem>>, vector<6x96xf32>
    %c0_1 = arith.constant 0 : index
    %c0_2 = arith.constant 0 : index
    %1 = vector.load %arg2[%c0_1, %c0_2] : memref<96x6xf32, #tpu.memory_space<vmem>>, vector<96x6xf32>
    %cst = arith.constant dense<0.000000e+00> : vector<6x6xf32>
    %2 = tpu.matmul %0, %1, %cst {dimension_numbers = #tpu.dot_dimension_numbers<[1], [0], [0], [1], [0, 0, 1, 1], [], []>} : vector<6x96xf32>, vector<96x6xf32>, vector<6x6xf32> -> vector<6x6xf32>
    %c0_3 = arith.constant 0 : index
    %c0_4 = arith.constant 0 : index
    %3 = vector.load %arg3[%c0_3, %c0_4] : memref<6x6xf32, #tpu.memory_space<vmem>>, vector<6x6xf32>
    tpu.vector_store %arg3[%c0_3, %c0_4], %2 {strides = array<i32>} : memref<6x6xf32, #tpu.memory_space<vmem>>, vector<6x6xf32>,
    return
  }
  func.func @transform_0(%arg0: i32) -> (i32, i32) {
    %c0_i32 = arith.constant 0 : i32
    %c0_i32_0 = arith.constant 0 : i32
    return %arg0, %c0_i32 : i32, i32
  }
  func.func @transform_1(%arg0: i32) -> (i32, i32) {
    %c0_i32 = arith.constant 0 : i32
    %c0_i32_0 = arith.constant 0 : i32
    %c0_i32_1 = arith.constant 0 : i32
    return %c0_i32, %c0_i32_0 : i32, i32
  }
  func.func @transform_2(%arg0: i32) -> (i32, i32) {
    %c0_i32 = arith.constant 0 : i32
    %c0_i32_0 = arith.constant 0 : i32
    return %arg0, %c0_i32 : i32, i32
  }
}

</mosaic_0001>

<bundles_post_ra>
// kernel: tpu_custom_call.1
= control target key start
LH: loop header
LB: loop body
LE: loop exit
PB: predicated region body
PF: predicated region fallthrough
CT: control target
= control target key end

     0   :  { %s153_s0 = inlined_call_operand.vmem [shape: f32[6,96], index: 0, kind: input, shape index: {}]   ;;  %s154_s1 = inlined_call_operand.vmem [shape: f32[96,6], index: 1, kind: input, shape index: {}]   ;;  %s155_s2 = inlined_call_operand.hbm [shape: f32[6,6], index: 2, kind: output, shape index: {}]  }
   0x1   :  { %v24_v0 = vld [vmem:[%s154_s1 + $0x58] sm:$0xff]  ;;  %v23_v1 = vld [vmem:[%s154_s1 + $0x50] sm:$0xff]  ;;  %v22_v2 = vld [vmem:[%s154_s1 + $0x48] sm:$0xff] }
   0x2   :  { %33 = vmatpush.msra.mxu0 %v24_v0  ;;  %v21_v3 = vld [vmem:[%s154_s1 + $0x40] sm:$0xff] }
   0x4   :  { %34 = vmatpush.msra.mxu0 %v23_v1 }
   0x5   :  { %7 = vsyncpa [#allocation3], 0  ;;  %v20_v4 = vld [vmem:[%s154_s1 + $0x38] sm:$0xff]  ;;  %v19_v5 = vld [vmem:[%s154_s1 + $0x30] sm:$0xff]  ;;  %vm25_vm0 = vcmask 785408   ;;  %s95_s7 = smov [#allocation2]  }
   0x6   :  { %35 = vmatpush.msra.mxu0 %v22_v2  ;;  %v18_v6 = vld [vmem:[%s154_s1 + $0x28] sm:$0xff]  ;;  %v17_v7 = vld [vmem:[%s154_s1 + $0x20] sm:$0xff]  ;;  %v16_v8 = vld [vmem:[%s154_s1 + $0x18] sm:$0xff]  ;;  %s56_s8 = sshll.u32 %s95_s7, 4  ;;  %s58_s11 = sshll.u32 %s155_s2, 4  ;;  %vm49_vm1 = vcmask 46080   ;;  %s57_s8 = int_to_ptr.vmem [resolvable:$true] %s56_s8  ;;  %s59_s11 = int_to_ptr.hbm [resolvable:$true] %s58_s11 }
   0x7   :  { %v15_v9 = vld [vmem:[%s154_s1 + $0x10] sm:$0xff]  ;;  %v14_v10 = vld [vmem:[%s154_s1 + $0x8] sm:$0xff]  ;;  %v13_v11 = vld [vmem:[%s154_s1] sm:$0xff] }
   0x8   :  { %36 = vmatpush.msra.mxu0 %v21_v3  ;;  %v12_v12 = vld [vmem:[%s153_s0] sm:$0x3f] }
   0xa   :  { %37 = vmatpush.msra.mxu0 %v20_v4 }
   0xc   :  { %38 = vmatpush.msra.mxu0 %v19_v5 }
   0xe   :  { %39 = vmatpush.msra.mxu0 %v18_v6 }
  0x10   :  { %40 = vmatpush.msra.mxu0 %v17_v7 }
  0x12   :  { %41 = vmatpush.msra.mxu0 %v16_v8 }
  0x14   :  { %42 = vmatpush.msra.mxu0 %v15_v9 }
  0x16   :  { %43 = vmatpush.msra.mxu0 %v14_v10 }
  0x18   :  { %44 = vmatpush.msra.mxu0 %v13_v11 }
  0x19   :  { %67 = vmatmul.msk.f32.vlgmr.msra.gmra.mxu0 %vm25_vm0, %v12_v12 }
  0x96   :  { %v46_v13 = vpop.f32.mrf.mxu0 }
  0x97   :  { %50 = vst.msk [vmem:[#allocation2] sm:$0x3f] %vm49_vm1, %v46_v13 }
  0x98   :  { %61 = dma.vmem_to_hbm [thread:$0]  %s57_s8, 128, %s59_s11, [#allocation3]  }
  0x99   :  { %93 = dma.done.wait [#allocation3], 128  }
  0x9a   :  { %94 = vsyncadd [#allocation3], 4294967168 }
  0x9b   :  { %66 = vsyncpa [#allocation3], 1 }

</bundles_post_ra>
